<compile_context>
chip_gen: v5e
topology: v5e:2x2
jax: 0.10.0
libtpu: 0.0.40
codegen_flags: <defaults>
</compile_context>

<pallas_src>
import functools
import math

import jax
import jax.numpy as jnp
from jax import lax
from jax.experimental import pallas as pl
from jax.experimental.pallas import tpu as pltpu


def _mha_kernel(q_ref, k_ref, v_ref,
                wq_ref, bq_ref, wk_ref, bk_ref, wv_ref, bv_ref,
                wo_ref, bo_ref,
                y_ref, attn_ref,
                kc_ref, vc_ref,
                *, head_num):
    qt = pl.program_id(1)
    in_features = wq_ref.shape[0]
    d = in_features // head_num
    scale = 1.0 / math.sqrt(float(d))

    # K / V projections depend only on the batch element, not on the query
    # tile: compute them once (first query tile) and cache bf16 results in
    # VMEM scratch for the remaining tiles of this batch element.
    @pl.when(qt == 0)
    def _project_kv():
        x_k = k_ref[0]                                       # (S, F) bf16
        x_v = v_ref[0]
        kh = jnp.maximum(
            jnp.dot(x_k, wk_ref[...], preferred_element_type=jnp.float32)
            + bk_ref[...], 0.0)                              # (S, F) f32
        vh = jnp.maximum(
            jnp.dot(x_v, wv_ref[...], preferred_element_type=jnp.float32)
            + bv_ref[...], 0.0)
        kc_ref[...] = kh.astype(jnp.bfloat16)
        vc_ref[...] = vh.astype(jnp.bfloat16)

    # Q projection for this query tile: one full-width matmul for all heads.
    x_q = q_ref[0]                                           # (Tq, F) bf16
    q_proj = jnp.maximum(
        jnp.dot(x_q, wq_ref[...], preferred_element_type=jnp.float32)
        + bq_ref[...], 0.0)                                  # (Tq, F) f32
    # Fold 1/sqrt(d) into q (Tq*F multiplies instead of H*Tq*S on the scores).
    q_bf = (q_proj * scale).astype(jnp.bfloat16)

    k_all = kc_ref[...]                                      # (S, F) bf16
    v_all = vc_ref[...]

    ctx_parts = []
    for h in range(head_num):                                # static unroll
        lo = h * d
        qh = q_bf[:, lo:lo + d]                              # (Tq, d)
        kh = k_all[:, lo:lo + d]                             # (S, d)
        vh = v_all[:, lo:lo + d]

        # scores = q @ k^T without materializing a transpose.
        scores = lax.dot_general(qh, kh, (((1,), (1,)), ((), ())),
                                 preferred_element_type=jnp.float32)  # (Tq, S)

        # Softmax in f32 (max-subtracted, exact divide for reference parity).
        m = jnp.max(scores, axis=-1, keepdims=True)
        e = jnp.exp(scores - m)
        attn = e / jnp.sum(e, axis=-1, keepdims=True)        # (Tq, S)
        attn_ref[0, h] = attn.astype(attn_ref.dtype)

        ctx_parts.append(jnp.dot(attn.astype(jnp.bfloat16), vh,
                                 preferred_element_type=jnp.float32))  # (Tq, d)

    # Output projection over the concatenated heads: one full-width matmul.
    ctx = jnp.concatenate(ctx_parts, axis=-1).astype(jnp.bfloat16)     # (Tq, F)
    y = jnp.maximum(
        jnp.dot(ctx, wo_ref[...], preferred_element_type=jnp.float32)
        + bo_ref[...], 0.0)
    y_ref[0] = y.astype(y_ref.dtype)


def _pick_query_tile(seq_len):
    """Largest query tile (<=256, multiple of 8) that divides seq_len."""
    if seq_len <= 256:
        return seq_len
    for t in (256, 128, 64, 32, 16, 8):
        if seq_len % t == 0:
            return t
    return seq_len


def _vmem_limit_bytes():
    """Per-generation scoped VMEM limit (~3/4 of physical, capped at 100 MiB)."""
    try:
        cap = pltpu.get_tpu_info().vmem_capacity_bytes
    except Exception:  # conservative fallback (v7x-sized)
        cap = 64 * 1024 * 1024
    return int(min(cap * 3 // 4, 100 * 1024 * 1024))


def multi_head_attention_op(q, k, v, params, head_num, attn_dtype=jnp.float32):
    """q, k, v: (B, S, F) float32.  Returns (y: (B, S, F), attn: (B*H, S, S))."""
    B, S, F = q.shape
    if F % head_num != 0:
        raise ValueError(
            f"in_features ({F}) must be divisible by head_num ({head_num})")
    wq, bq, wk, bk, wv, bv, wo, bo = params

    # One-time bf16 casts outside the kernel; biases stay f32 (2-D for TPU).
    q_b = q.astype(jnp.bfloat16)
    k_b = k.astype(jnp.bfloat16)
    v_b = v.astype(jnp.bfloat16)
    wq_b = wq.astype(jnp.bfloat16)
    wk_b = wk.astype(jnp.bfloat16)
    wv_b = wv.astype(jnp.bfloat16)
    wo_b = wo.astype(jnp.bfloat16)
    bq2 = bq.reshape(1, F)
    bk2 = bk.reshape(1, F)
    bv2 = bv.reshape(1, F)
    bo2 = bo.reshape(1, F)

    tq = _pick_query_tile(S)
    n_qt = S // tq

    x_q_spec = pl.BlockSpec((1, tq, F), lambda b, t: (b, t, 0))
    x_kv_spec = pl.BlockSpec((1, S, F), lambda b, t: (b, 0, 0))  # const over t
    w_spec = pl.BlockSpec((F, F), lambda b, t: (0, 0))           # grid-invariant
    b_spec = pl.BlockSpec((1, F), lambda b, t: (0, 0))
    y_spec = pl.BlockSpec((1, tq, F), lambda b, t: (b, t, 0))
    attn_spec = pl.BlockSpec((1, head_num, tq, S), lambda b, t: (b, 0, t, 0))

    y, attn = pl.pallas_call(
        functools.partial(_mha_kernel, head_num=head_num),
        out_shape=(
            jax.ShapeDtypeStruct((B, S, F), q.dtype),
            jax.ShapeDtypeStruct((B, head_num, S, S), attn_dtype),
        ),
        grid_spec=pltpu.PrefetchScalarGridSpec(
            num_scalar_prefetch=0,
            grid=(B, n_qt),
            in_specs=[x_q_spec, x_kv_spec, x_kv_spec,
                      w_spec, b_spec, w_spec, b_spec, w_spec, b_spec,
                      w_spec, b_spec],
            out_specs=[y_spec, attn_spec],
            scratch_shapes=[pltpu.VMEM((S, F), jnp.bfloat16),   # cached K proj
                            pltpu.VMEM((S, F), jnp.bfloat16)],  # cached V proj
        ),
        compiler_params=pltpu.CompilerParams(
            # Query-tile axis must stay "arbitrary": the cached K/V projections
            # in scratch rely on sequential t iteration per batch element.
            dimension_semantics=("parallel", "arbitrary"),
            vmem_limit_bytes=_vmem_limit_bytes(),
        ),
    )(q_b, k_b, v_b, wq_b, bq2, wk_b, bk2, wv_b, bv2, wo_b, bo2)

    # PyTorch's _reshape_to_batches ordering is index = b * head_num + h.
    return y, attn.reshape(B * head_num, S, S)


def init_params(key, in_features):
    ks = jax.random.split(key, 8)
    scale = 1.0 / math.sqrt(in_features)

    def w(k):
        return jax.random.uniform(k, (in_features, in_features),
                                  jnp.float32, -scale, scale)

    def b(k):
        return jax.random.uniform(k, (in_features,),
                                  jnp.float32, -scale, scale)

    return (w(ks[0]), b(ks[1]), w(ks[2]), b(ks[3]),
            w(ks[4]), b(ks[5]), w(ks[6]), b(ks[7]))


if __name__ == "__main__":
    B, S, F_in, H = 2, 8, 32, 4

    key = jax.random.PRNGKey(0)
    kq, kk, kv, kp = jax.random.split(key, 4)
    q = jax.random.normal(kq, (B, S, F_in), jnp.float32)
    k = jax.random.normal(kk, (B, S, F_in), jnp.float32)
    v = jax.random.normal(kv, (B, S, F_in), jnp.float32)
    params = init_params(kp, F_in)

    y, attn = multi_head_attention_op(q, k, v, params, head_num=H)
    jax.block_until_ready((y, attn))

    assert y.shape == (B, S, F_in)
    assert attn.shape == (B * H, S, S)
    print("KERNEL_OK")
</pallas_src>

<mosaic_0001>
module attributes {stable_mosaic.version = 11 : i64} {
  func.func @_mha_kernel(%arg0: i32, %arg1: i32, %arg2: memref<1x8x32xbf16, #tpu.memory_space<vmem>>, %arg3: memref<1x8x32xbf16, #tpu.memory_space<vmem>>, %arg4: memref<1x8x32xbf16, #tpu.memory_space<vmem>>, %arg5: memref<32x32xbf16, #tpu.memory_space<vmem>>, %arg6: memref<1x32xf32, #tpu.memory_space<vmem>>, %arg7: memref<32x32xbf16, #tpu.memory_space<vmem>>, %arg8: memref<1x32xf32, #tpu.memory_space<vmem>>, %arg9: memref<32x32xbf16, #tpu.memory_space<vmem>>, %arg10: memref<1x32xf32, #tpu.memory_space<vmem>>, %arg11: memref<32x32xbf16, #tpu.memory_space<vmem>>, %arg12: memref<1x32xf32, #tpu.memory_space<vmem>>, %arg13: memref<1x8x32xf32, #tpu.memory_space<vmem>>, %arg14: memref<1x4x8x8xf32, #tpu.memory_space<vmem>>, %arg15: memref<8x32xbf16, #tpu.memory_space<vmem>>, %arg16: memref<8x32xbf16, #tpu.memory_space<vmem>>) attributes {dimension_semantics = [#tpu.dimension_semantics<parallel>, #tpu.dimension_semantics<arbitrary>], iteration_bounds = array<i64: 2, 1>, scalar_prefetch = 0 : i64, scratch_operands = 2 : i64, tpu.core_type = #tpu.core_type<tc>, window_params = [{transform_indices = @transform_0, window_bounds = array<i64: 1, 8, 32>}, {transform_indices = @transform_1, window_bounds = array<i64: 1, 8, 32>}, {transform_indices = @transform_2, window_bounds = array<i64: 1, 8, 32>}, {pipeline_mode = #tpu.pipeline_mode<synchronous>, transform_indices = @transform_3, window_bounds = array<i64: 32, 32>}, {pipeline_mode = #tpu.pipeline_mode<synchronous>, transform_indices = @transform_4, window_bounds = array<i64: 1, 32>}, {pipeline_mode = #tpu.pipeline_mode<synchronous>, transform_indices = @transform_5, window_bounds = array<i64: 32, 32>}, {pipeline_mode = #tpu.pipeline_mode<synchronous>, transform_indices = @transform_6, window_bounds = array<i64: 1, 32>}, {pipeline_mode = #tpu.pipeline_mode<synchronous>, transform_indices = @transform_7, window_bounds = array<i64: 32, 32>}, {pipeline_mode = #tpu.pipeline_mode<synchronous>, transform_indices = @transform_8, window_bounds = array<i64: 1, 32>}, {pipeline_mode = #tpu.pipeline_mode<synchronous>, transform_indices = @transform_9, window_bounds = array<i64: 32, 32>}, {pipeline_mode = #tpu.pipeline_mode<synchronous>, transform_indices = @transform_10, window_bounds = array<i64: 1, 32>}, {transform_indices = @transform_11, window_bounds = array<i64: 1, 8, 32>}, {transform_indices = @transform_12, window_bounds = array<i64: 1, 4, 8, 8>}]} {
    %c0_i32 = arith.constant 0 : i32
    %0 = arith.cmpi eq, %arg1, %c0_i32 : i32
    %1 = arith.extui %0 : i1 to i32
    %c0_i32_0 = arith.constant 0 : i32
    %2 = arith.cmpi ne, %1, %c0_i32_0 : i32
    scf.if %2 {
      %c0_51 = arith.constant 0 : index
      %c0_52 = arith.constant 0 : index
      %c0_53 = arith.constant 0 : index
      %101 = vector.load %arg3[%c0_51, %c0_52, %c0_53] : memref<1x8x32xbf16, #tpu.memory_space<vmem>>, vector<1x8x32xbf16>
      %102 = vector.shape_cast %101 : vector<1x8x32xbf16> to vector<8x32xbf16>
      %c0_54 = arith.constant 0 : index
      %c0_55 = arith.constant 0 : index
      %c0_56 = arith.constant 0 : index
      %103 = vector.load %arg4[%c0_54, %c0_55, %c0_56] : memref<1x8x32xbf16, #tpu.memory_space<vmem>>, vector<1x8x32xbf16>
      %104 = vector.shape_cast %103 : vector<1x8x32xbf16> to vector<8x32xbf16>
      %c0_57 = arith.constant 0 : index
      %c0_58 = arith.constant 0 : index
      %105 = vector.load %arg7[%c0_57, %c0_58] : memref<32x32xbf16, #tpu.memory_space<vmem>>, vector<32x32xbf16>
      %cst_59 = arith.constant dense<0.000000e+00> : vector<8x32xf32>
      %106 = tpu.matmul %102, %105, %cst_59 {dimension_numbers = #tpu.dot_dimension_numbers<[1], [0], [0], [1], [0, 0, 1, 1], [], []>} : vector<8x32xbf16>, vector<32x32xbf16>, vector<8x32xf32> -> vector<8x32xf32>
      %c0_60 = arith.constant 0 : index
      %c0_61 = arith.constant 0 : index
      %107 = vector.load %arg8[%c0_60, %c0_61] : memref<1x32xf32, #tpu.memory_space<vmem>>, vector<1x32xf32>
      %108 = vector.broadcast %107 : vector<1x32xf32> to vector<8x32xf32>
      %109 = arith.addf %106, %108 : vector<8x32xf32>
      %cst_62 = arith.constant 0.000000e+00 : f32
      %110 = vector.broadcast %cst_62 : f32 to vector<8x32xf32>
      %111 = arith.maximumf %109, %110 : vector<8x32xf32>
      %c0_63 = arith.constant 0 : index
      %c0_64 = arith.constant 0 : index
      %112 = vector.load %arg9[%c0_63, %c0_64] : memref<32x32xbf16, #tpu.memory_space<vmem>>, vector<32x32xbf16>
      %cst_65 = arith.constant dense<0.000000e+00> : vector<8x32xf32>
      %113 = tpu.matmul %104, %112, %cst_65 {dimension_numbers = #tpu.dot_dimension_numbers<[1], [0], [0], [1], [0, 0, 1, 1], [], []>} : vector<8x32xbf16>, vector<32x32xbf16>, vector<8x32xf32> -> vector<8x32xf32>
      %c0_66 = arith.constant 0 : index
      %c0_67 = arith.constant 0 : index
      %114 = vector.load %arg10[%c0_66, %c0_67] : memref<1x32xf32, #tpu.memory_space<vmem>>, vector<1x32xf32>
      %115 = vector.broadcast %114 : vector<1x32xf32> to vector<8x32xf32>
      %116 = arith.addf %113, %115 : vector<8x32xf32>
      %cst_68 = arith.constant 0.000000e+00 : f32
      %117 = vector.broadcast %cst_68 : f32 to vector<8x32xf32>
      %118 = arith.maximumf %116, %117 : vector<8x32xf32>
      %119 = arith.truncf %111 : vector<8x32xf32> to vector<8x32xbf16>
      %c0_69 = arith.constant 0 : index
      %c0_70 = arith.constant 0 : index
      %120 = vector.load %arg15[%c0_69, %c0_70] : memref<8x32xbf16, #tpu.memory_space<vmem>>, vector<8x32xbf16>
      tpu.vector_store %arg15[%c0_69, %c0_70], %119 {strides = array<i32>} : memref<8x32xbf16, #tpu.memory_space<vmem>>, vector<8x32xbf16>,
      %121 = arith.truncf %118 : vector<8x32xf32> to vector<8x32xbf16>
      %c0_71 = arith.constant 0 : index
      %c0_72 = arith.constant 0 : index
      %122 = vector.load %arg16[%c0_71, %c0_72] : memref<8x32xbf16, #tpu.memory_space<vmem>>, vector<8x32xbf16>
      tpu.vector_store %arg16[%c0_71, %c0_72], %121 {strides = array<i32>} : memref<8x32xbf16, #tpu.memory_space<vmem>>, vector<8x32xbf16>,
    } else {
    }
    %c0 = arith.constant 0 : index
    %c0_1 = arith.constant 0 : index
    %c0_2 = arith.constant 0 : index
    %3 = vector.load %arg2[%c0, %c0_1, %c0_2] : memref<1x8x32xbf16, #tpu.memory_space<vmem>>, vector<1x8x32xbf16>
    %4 = vector.shape_cast %3 : vector<1x8x32xbf16> to vector<8x32xbf16>
    %c0_3 = arith.constant 0 : index
    %c0_4 = arith.constant 0 : index
    %5 = vector.load %arg5[%c0_3, %c0_4] : memref<32x32xbf16, #tpu.memory_space<vmem>>, vector<32x32xbf16>
    %cst = arith.constant dense<0.000000e+00> : vector<8x32xf32>
    %6 = tpu.matmul %4, %5, %cst {dimension_numbers = #tpu.dot_dimension_numbers<[1], [0], [0], [1], [0, 0, 1, 1], [], []>} : vector<8x32xbf16>, vector<32x32xbf16>, vector<8x32xf32> -> vector<8x32xf32>
    %c0_5 = arith.constant 0 : index
    %c0_6 = arith.constant 0 : index
    %7 = vector.load %arg6[%c0_5, %c0_6] : memref<1x32xf32, #tpu.memory_space<vmem>>, vector<1x32xf32>
    %8 = vector.broadcast %7 : vector<1x32xf32> to vector<8x32xf32>
    %9 = arith.addf %6, %8 : vector<8x32xf32>
    %cst_7 = arith.constant 0.000000e+00 : f32
    %10 = vector.broadcast %cst_7 : f32 to vector<8x32xf32>
    %11 = arith.maximumf %9, %10 : vector<8x32xf32>
    %cst_8 = arith.constant 0.353553385 : f32
    %12 = vector.broadcast %cst_8 : f32 to vector<8x32xf32>
    %13 = arith.mulf %11, %12 : vector<8x32xf32>
    %14 = arith.truncf %13 : vector<8x32xf32> to vector<8x32xbf16>
    %c0_9 = arith.constant 0 : index
    %c0_10 = arith.constant 0 : index
    %15 = vector.load %arg15[%c0_9, %c0_10] : memref<8x32xbf16, #tpu.memory_space<vmem>>, vector<8x32xbf16>
    %c0_11 = arith.constant 0 : index
    %c0_12 = arith.constant 0 : index
    %16 = vector.load %arg16[%c0_11, %c0_12] : memref<8x32xbf16, #tpu.memory_space<vmem>>, vector<8x32xbf16>
    %17 = vector.extract_strided_slice %14 {offsets = [0, 0], sizes = [8, 8], strides = [1, 1]} : vector<8x32xbf16> to vector<8x8xbf16>
    %18 = vector.extract_strided_slice %15 {offsets = [0, 0], sizes = [8, 8], strides = [1, 1]} : vector<8x32xbf16> to vector<8x8xbf16>
    %19 = vector.extract_strided_slice %16 {offsets = [0, 0], sizes = [8, 8], strides = [1, 1]} : vector<8x32xbf16> to vector<8x8xbf16>
    %cst_13 = arith.constant dense<0.000000e+00> : vector<8x8xf32>
    %20 = tpu.matmul %17, %18, %cst_13 {dimension_numbers = #tpu.dot_dimension_numbers<[1], [1], [0], [0], [0, 0, 1, 0], [], []>} : vector<8x8xbf16>, vector<8x8xbf16>, vector<8x8xf32> -> vector<8x8xf32>
    %cst_14 = arith.constant dense<0xFF800000> : vector<8xf32>
    %21 = vector.multi_reduction <maximumf>, %20, %cst_14 [1] : vector<8x8xf32> to vector<8xf32>
    %22 = vector.shape_cast %21 : vector<8xf32> to vector<8x1xf32>
    %23 = vector.broadcast %22 : vector<8x1xf32> to vector<8x8xf32>
    %24 = arith.subf %20, %23 : vector<8x8xf32>
    %25 = math.exp %24 : vector<8x8xf32>
    %cst_15 = arith.constant dense<0.000000e+00> : vector<8xf32>
    %26 = vector.multi_reduction <add>, %25, %cst_15 [1] : vector<8x8xf32> to vector<8xf32>
    %27 = vector.shape_cast %26 : vector<8xf32> to vector<8x1xf32>
    %28 = vector.broadcast %27 : vector<8x1xf32> to vector<8x8xf32>
    %29 = arith.divf %25, %28 : vector<8x8xf32>
    %c0_16 = arith.constant 0 : index
    %c0_17 = arith.constant 0 : index
    %c0_18 = arith.constant 0 : index
    %c0_19 = arith.constant 0 : index
    %30 = vector.load %arg14[%c0_16, %c0_17, %c0_18, %c0_19] : memref<1x4x8x8xf32, #tpu.memory_space<vmem>>, vector<1x1x8x8xf32>
    %31 = vector.shape_cast %30 : vector<1x1x8x8xf32> to vector<8x8xf32>
    %32 = vector.shape_cast %29 : vector<8x8xf32> to vector<1x1x8x8xf32>
    tpu.vector_store %arg14[%c0_16, %c0_17, %c0_18, %c0_19], %32 {strides = array<i32>} : memref<1x4x8x8xf32, #tpu.memory_space<vmem>>, vector<1x1x8x8xf32>,
    %33 = arith.truncf %29 : vector<8x8xf32> to vector<8x8xbf16>
    %cst_20 = arith.constant dense<0.000000e+00> : vector<8x8xf32>
    %34 = tpu.matmul %33, %19, %cst_20 {dimension_numbers = #tpu.dot_dimension_numbers<[1], [0], [0], [1], [0, 0, 1, 1], [], []>} : vector<8x8xbf16>, vector<8x8xbf16>, vector<8x8xf32> -> vector<8x8xf32>
    %35 = vector.extract_strided_slice %14 {offsets = [0, 8], sizes = [8, 8], strides = [1, 1]} : vector<8x32xbf16> to vector<8x8xbf16>
    %36 = vector.extract_strided_slice %15 {offsets = [0, 8], sizes = [8, 8], strides = [1, 1]} : vector<8x32xbf16> to vector<8x8xbf16>
    %37 = vector.extract_strided_slice %16 {offsets = [0, 8], sizes = [8, 8], strides = [1, 1]} : vector<8x32xbf16> to vector<8x8xbf16>
    %cst_21 = arith.constant dense<0.000000e+00> : vector<8x8xf32>
    %38 = tpu.matmul %35, %36, %cst_21 {dimension_numbers = #tpu.dot_dimension_numbers<[1], [1], [0], [0], [0, 0, 1, 0], [], []>} : vector<8x8xbf16>, vector<8x8xbf16>, vector<8x8xf32> -> vector<8x8xf32>
    %cst_22 = arith.constant dense<0xFF800000> : vector<8xf32>
    %39 = vector.multi_reduction <maximumf>, %38, %cst_22 [1] : vector<8x8xf32> to vector<8xf32>
    %40 = vector.shape_cast %39 : vector<8xf32> to vector<8x1xf32>
    %41 = vector.broadcast %40 : vector<8x1xf32> to vector<8x8xf32>
    %42 = arith.subf %38, %41 : vector<8x8xf32>
    %43 = math.exp %42 : vector<8x8xf32>
    %cst_23 = arith.constant dense<0.000000e+00> : vector<8xf32>
    %44 = vector.multi_reduction <add>, %43, %cst_23 [1] : vector<8x8xf32> to vector<8xf32>
    %45 = vector.shape_cast %44 : vector<8xf32> to vector<8x1xf32>
    %46 = vector.broadcast %45 : vector<8x1xf32> to vector<8x8xf32>
    %47 = arith.divf %43, %46 : vector<8x8xf32>
    %c0_24 = arith.constant 0 : index
    %c1 = arith.constant 1 : index
    %c0_25 = arith.constant 0 : index
    %c0_26 = arith.constant 0 : index
    %48 = vector.load %arg14[%c0_24, %c1, %c0_25, %c0_26] : memref<1x4x8x8xf32, #tpu.memory_space<vmem>>, vector<1x1x8x8xf32>
    %49 = vector.shape_cast %48 : vector<1x1x8x8xf32> to vector<8x8xf32>
    %50 = vector.shape_cast %47 : vector<8x8xf32> to vector<1x1x8x8xf32>
    tpu.vector_store %arg14[%c0_24, %c1, %c0_25, %c0_26], %50 {strides = array<i32>} : memref<1x4x8x8xf32, #tpu.memory_space<vmem>>, vector<1x1x8x8xf32>,
    %51 = arith.truncf %47 : vector<8x8xf32> to vector<8x8xbf16>
    %cst_27 = arith.constant dense<0.000000e+00> : vector<8x8xf32>
    %52 = tpu.matmul %51, %37, %cst_27 {dimension_numbers = #tpu.dot_dimension_numbers<[1], [0], [0], [1], [0, 0, 1, 1], [], []>} : vector<8x8xbf16>, vector<8x8xbf16>, vector<8x8xf32> -> vector<8x8xf32>
    %53 = vector.extract_strided_slice %14 {offsets = [0, 16], sizes = [8, 8], strides = [1, 1]} : vector<8x32xbf16> to vector<8x8xbf16>
    %54 = vector.extract_strided_slice %15 {offsets = [0, 16], sizes = [8, 8], strides = [1, 1]} : vector<8x32xbf16> to vector<8x8xbf16>
    %55 = vector.extract_strided_slice %16 {offsets = [0, 16], sizes = [8, 8], strides = [1, 1]} : vector<8x32xbf16> to vector<8x8xbf16>
    %cst_28 = arith.constant dense<0.000000e+00> : vector<8x8xf32>
    %56 = tpu.matmul %53, %54, %cst_28 {dimension_numbers = #tpu.dot_dimension_numbers<[1], [1], [0], [0], [0, 0, 1, 0], [], []>} : vector<8x8xbf16>, vector<8x8xbf16>, vector<8x8xf32> -> vector<8x8xf32>
    %cst_29 = arith.constant dense<0xFF800000> : vector<8xf32>
    %57 = vector.multi_reduction <maximumf>, %56, %cst_29 [1] : vector<8x8xf32> to vector<8xf32>
    %58 = vector.shape_cast %57 : vector<8xf32> to vector<8x1xf32>
    %59 = vector.broadcast %58 : vector<8x1xf32> to vector<8x8xf32>
    %60 = arith.subf %56, %59 : vector<8x8xf32>
    %61 = math.exp %60 : vector<8x8xf32>
    %cst_30 = arith.constant dense<0.000000e+00> : vector<8xf32>
    %62 = vector.multi_reduction <add>, %61, %cst_30 [1] : vector<8x8xf32> to vector<8xf32>
    %63 = vector.shape_cast %62 : vector<8xf32> to vector<8x1xf32>
    %64 = vector.broadcast %63 : vector<8x1xf32> to vector<8x8xf32>
    %65 = arith.divf %61, %64 : vector<8x8xf32>
    %c0_31 = arith.constant 0 : index
    %c2 = arith.constant 2 : index
    %c0_32 = arith.constant 0 : index
    %c0_33 = arith.constant 0 : index
    %66 = vector.load %arg14[%c0_31, %c2, %c0_32, %c0_33] : memref<1x4x8x8xf32, #tpu.memory_space<vmem>>, vector<1x1x8x8xf32>
    %67 = vector.shape_cast %66 : vector<1x1x8x8xf32> to vector<8x8xf32>
    %68 = vector.shape_cast %65 : vector<8x8xf32> to vector<1x1x8x8xf32>
    tpu.vector_store %arg14[%c0_31, %c2, %c0_32, %c0_33], %68 {strides = array<i32>} : memref<1x4x8x8xf32, #tpu.memory_space<vmem>>, vector<1x1x8x8xf32>,
    %69 = arith.truncf %65 : vector<8x8xf32> to vector<8x8xbf16>
    %cst_34 = arith.constant dense<0.000000e+00> : vector<8x8xf32>
    %70 = tpu.matmul %69, %55, %cst_34 {dimension_numbers = #tpu.dot_dimension_numbers<[1], [0], [0], [1], [0, 0, 1, 1], [], []>} : vector<8x8xbf16>, vector<8x8xbf16>, vector<8x8xf32> -> vector<8x8xf32>
    %71 = vector.extract_strided_slice %14 {offsets = [0, 24], sizes = [8, 8], strides = [1, 1]} : vector<8x32xbf16> to vector<8x8xbf16>
    %72 = vector.extract_strided_slice %15 {offsets = [0, 24], sizes = [8, 8], strides = [1, 1]} : vector<8x32xbf16> to vector<8x8xbf16>
    %73 = vector.extract_strided_slice %16 {offsets = [0, 24], sizes = [8, 8], strides = [1, 1]} : vector<8x32xbf16> to vector<8x8xbf16>
    %cst_35 = arith.constant dense<0.000000e+00> : vector<8x8xf32>
    %74 = tpu.matmul %71, %72, %cst_35 {dimension_numbers = #tpu.dot_dimension_numbers<[1], [1], [0], [0], [0, 0, 1, 0], [], []>} : vector<8x8xbf16>, vector<8x8xbf16>, vector<8x8xf32> -> vector<8x8xf32>
    %cst_36 = arith.constant dense<0xFF800000> : vector<8xf32>
    %75 = vector.multi_reduction <maximumf>, %74, %cst_36 [1] : vector<8x8xf32> to vector<8xf32>
    %76 = vector.shape_cast %75 : vector<8xf32> to vector<8x1xf32>
    %77 = vector.broadcast %76 : vector<8x1xf32> to vector<8x8xf32>
    %78 = arith.subf %74, %77 : vector<8x8xf32>
    %79 = math.exp %78 : vector<8x8xf32>
    %cst_37 = arith.constant dense<0.000000e+00> : vector<8xf32>
    %80 = vector.multi_reduction <add>, %79, %cst_37 [1] : vector<8x8xf32> to vector<8xf32>
    %81 = vector.shape_cast %80 : vector<8xf32> to vector<8x1xf32>
    %82 = vector.broadcast %81 : vector<8x1xf32> to vector<8x8xf32>
    %83 = arith.divf %79, %82 : vector<8x8xf32>
    %c0_38 = arith.constant 0 : index
    %c3 = arith.constant 3 : index
    %c0_39 = arith.constant 0 : index
    %c0_40 = arith.constant 0 : index
    %84 = vector.load %arg14[%c0_38, %c3, %c0_39, %c0_40] : memref<1x4x8x8xf32, #tpu.memory_space<vmem>>, vector<1x1x8x8xf32>
    %85 = vector.shape_cast %84 : vector<1x1x8x8xf32> to vector<8x8xf32>
    %86 = vector.shape_cast %83 : vector<8x8xf32> to vector<1x1x8x8xf32>
    tpu.vector_store %arg14[%c0_38, %c3, %c0_39, %c0_40], %86 {strides = array<i32>} : memref<1x4x8x8xf32, #tpu.memory_space<vmem>>, vector<1x1x8x8xf32>,
    %87 = arith.truncf %83 : vector<8x8xf32> to vector<8x8xbf16>
    %cst_41 = arith.constant dense<0.000000e+00> : vector<8x8xf32>
    %88 = tpu.matmul %87, %73, %cst_41 {dimension_numbers = #tpu.dot_dimension_numbers<[1], [0], [0], [1], [0, 0, 1, 1], [], []>} : vector<8x8xbf16>, vector<8x8xbf16>, vector<8x8xf32> -> vector<8x8xf32>
    %89 = tpu.concatenate %34, %52, %70, %88 in 1 : vector<8x8xf32>, vector<8x8xf32>, vector<8x8xf32>, vector<8x8xf32> -> vector<8x32xf32>
    %90 = arith.truncf %89 : vector<8x32xf32> to vector<8x32xbf16>
    %c0_42 = arith.constant 0 : index
    %c0_43 = arith.constant 0 : index
    %91 = vector.load %arg11[%c0_42, %c0_43] : memref<32x32xbf16, #tpu.memory_space<vmem>>, vector<32x32xbf16>
    %cst_44 = arith.constant dense<0.000000e+00> : vector<8x32xf32>
    %92 = tpu.matmul %90, %91, %cst_44 {dimension_numbers = #tpu.dot_dimension_numbers<[1], [0], [0], [1], [0, 0, 1, 1], [], []>} : vector<8x32xbf16>, vector<32x32xbf16>, vector<8x32xf32> -> vector<8x32xf32>
    %c0_45 = arith.constant 0 : index
    %c0_46 = arith.constant 0 : index
    %93 = vector.load %arg12[%c0_45, %c0_46] : memref<1x32xf32, #tpu.memory_space<vmem>>, vector<1x32xf32>
    %94 = vector.broadcast %93 : vector<1x32xf32> to vector<8x32xf32>
    %95 = arith.addf %92, %94 : vector<8x32xf32>
    %cst_47 = arith.constant 0.000000e+00 : f32
    %96 = vector.broadcast %cst_47 : f32 to vector<8x32xf32>
    %97 = arith.maximumf %95, %96 : vector<8x32xf32>
    %c0_48 = arith.constant 0 : index
    %c0_49 = arith.constant 0 : index
    %c0_50 = arith.constant 0 : index
    %98 = vector.load %arg13[%c0_48, %c0_49, %c0_50] : memref<1x8x32xf32, #tpu.memory_space<vmem>>, vector<1x8x32xf32>
    %99 = vector.shape_cast %98 : vector<1x8x32xf32> to vector<8x32xf32>
    %100 = vector.shape_cast %97 : vector<8x32xf32> to vector<1x8x32xf32>
    tpu.vector_store %arg13[%c0_48, %c0_49, %c0_50], %100 {strides = array<i32>} : memref<1x8x32xf32, #tpu.memory_space<vmem>>, vector<1x8x32xf32>,
    return
  }
  func.func @transform_0(%arg0: i32, %arg1: i32) -> (i32, i32, i32) {
    %c0_i32 = arith.constant 0 : i32
    %c0_i32_0 = arith.constant 0 : i32
    return %arg0, %arg1, %c0_i32 : i32, i32, i32
  }
  func.func @transform_1(%arg0: i32, %arg1: i32) -> (i32, i32, i32) {
    %c0_i32 = arith.constant 0 : i32
    %c0_i32_0 = arith.constant 0 : i32
    %c0_i32_1 = arith.constant 0 : i32
    return %arg0, %c0_i32, %c0_i32_0 : i32, i32, i32
  }
  func.func @transform_2(%arg0: i32, %arg1: i32) -> (i32, i32, i32) {
    %c0_i32 = arith.constant 0 : i32
    %c0_i32_0 = arith.constant 0 : i32
    %c0_i32_1 = arith.constant 0 : i32
    return %arg0, %c0_i32, %c0_i32_0 : i32, i32, i32
  }
  func.func @transform_3(%arg0: i32, %arg1: i32) -> (i32, i32) {
    %c0_i32 = arith.constant 0 : i32
    %c0_i32_0 = arith.constant 0 : i32
    %c0_i32_1 = arith.constant 0 : i32
    return %c0_i32, %c0_i32_0 : i32, i32
  }
  func.func @transform_4(%arg0: i32, %arg1: i32) -> (i32, i32) {
    %c0_i32 = arith.constant 0 : i32
    %c0_i32_0 = arith.constant 0 : i32
    %c0_i32_1 = arith.constant 0 : i32
    return %c0_i32, %c0_i32_0 : i32, i32
  }
  func.func @transform_5(%arg0: i32, %arg1: i32) -> (i32, i32) {
    %c0_i32 = arith.constant 0 : i32
    %c0_i32_0 = arith.constant 0 : i32
    %c0_i32_1 = arith.constant 0 : i32
    return %c0_i32, %c0_i32_0 : i32, i32
  }
  func.func @transform_6(%arg0: i32, %arg1: i32) -> (i32, i32) {
    %c0_i32 = arith.constant 0 : i32
    %c0_i32_0 = arith.constant 0 : i32
    %c0_i32_1 = arith.constant 0 : i32
    return %c0_i32, %c0_i32_0 : i32, i32
  }
  func.func @transform_7(%arg0: i32, %arg1: i32) -> (i32, i32) {
    %c0_i32 = arith.constant 0 : i32
    %c0_i32_0 = arith.constant 0 : i32
    %c0_i32_1 = arith.constant 0 : i32
    return %c0_i32, %c0_i32_0 : i32, i32
  }
  func.func @transform_8(%arg0: i32, %arg1: i32) -> (i32, i32) {
    %c0_i32 = arith.constant 0 : i32
    %c0_i32_0 = arith.constant 0 : i32
    %c0_i32_1 = arith.constant 0 : i32
    return %c0_i32, %c0_i32_0 : i32, i32
  }
  func.func @transform_9(%arg0: i32, %arg1: i32) -> (i32, i32) {
    %c0_i32 = arith.constant 0 : i32
    %c0_i32_0 = arith.constant 0 : i32
    %c0_i32_1 = arith.constant 0 : i32
    return %c0_i32, %c0_i32_0 : i32, i32
  }
  func.func @transform_10(%arg0: i32, %arg1: i32) -> (i32, i32) {
    %c0_i32 = arith.constant 0 : i32
    %c0_i32_0 = arith.constant 0 : i32
    %c0_i32_1 = arith.constant 0 : i32
    return %c0_i32, %c0_i32_0 : i32, i32
  }
  func.func @transform_11(%arg0: i32, %arg1: i32) -> (i32, i32, i32) {
    %c0_i32 = arith.constant 0 : i32
    %c0_i32_0 = arith.constant 0 : i32
    return %arg0, %arg1, %c0_i32 : i32, i32, i32
  }
  func.func @transform_12(%arg0: i32, %arg1: i32) -> (i32, i32, i32, i32) {
    %c0_i32 = arith.constant 0 : i32
    %c0_i32_0 = arith.constant 0 : i32
    %c0_i32_1 = arith.constant 0 : i32
    return %arg0, %c0_i32, %arg1, %c0_i32_0 : i32, i32, i32, i32
  }
}

</mosaic_0001>

<bundles_post_ra>
// kernel: tpu_custom_call.1
= control target key start
LH: loop header
LB: loop body
LE: loop exit
PB: predicated region body
PF: predicated region fallthrough
CT: control target
= control target key end

     0   :  { %s2280_s0 = inlined_call_operand.hbm [shape: bf16[2,8,32], index: 0, kind: input, shape index: {}]   ;;  %s2281_s1 = inlined_call_operand.hbm [shape: bf16[2,8,32], index: 1, kind: input, shape index: {}]   ;;  %s2282_s2 = inlined_call_operand.hbm [shape: bf16[2,8,32], index: 2, kind: input, shape index: {}]   ;;  %s2283_s3 = inlined_call_operand.hbm [shape: bf16[32,32], index: 3, kind: input, shape index: {}]   ;;  %s2284_s4 = inlined_call_operand.vmem [shape: f32[1,32], index: 4, kind: input, shape index: {}]   ;;  %s2285_s5 = inlined_call_operand.hbm [shape: bf16[32,32], index: 5, kind: input, shape index: {}]   ;;  %s2286_s6 = inlined_call_operand.vmem [shape: f32[1,32], index: 6, kind: input, shape index: {}]   ;;  %s2287_s7 = inlined_call_operand.hbm [shape: bf16[32,32], index: 7, kind: input, shape index: {}]   ;;  %s2288_s8 = inlined_call_operand.vmem [shape: f32[1,32], index: 8, kind: input, shape index: {}]   ;;  %s2289_s9 = inlined_call_operand.hbm [shape: bf16[32,32], index: 9, kind: input, shape index: {}]   ;;  %s2290_s10 = inlined_call_operand.vmem [shape: f32[1,32], index: 10, kind: input, shape index: {}]   ;;  %s2291_s11 = inlined_call_operand.hbm [shape: f32[2,8,32], index: 11, kind: output, shape index: {0}]   ;;  %s2292_s12 = inlined_call_operand.hbm [shape: f32[2,4,8,8], index: 12, kind: output, shape index: {1}]  }
   0x1   :  { %2306 = sst [smem:[#allocation31_spill]] %s2280_s0 }
   0x2   :  { %2307 = sst [smem:[#allocation32_spill]] %s2281_s1 }
   0x3   :  { %2308 = sst [smem:[#allocation33_spill]] %s2283_s3 }
   0x4   :  { %2309 = sst [smem:[#allocation34_spill]] %s2285_s5 }
   0x5   :  { %2310 = sst [smem:[#allocation35_spill]] %s2287_s7 }
   0x6   :  { %2311 = sst [smem:[#allocation36_spill]] %s2289_s9 }
   0x7   :  { %2312 = sst [smem:[#allocation37_spill]] %s2290_s10 }
   0x8   :  { %2313 = sst [smem:[#allocation38_spill]] %s2291_s11 }
   0x9   :  { %2314 = sst [smem:[#allocation39_spill]] %s2292_s12 }
   0xa   :  { %18 = vsyncpa [#allocation5], 0 }
   0xb   :  { %20 = vsyncpa [#allocation5 + $0x1], 0 }
   0xc   :  { %21 = vsyncpa [#allocation8], 0 }
   0xd   :  { %23 = vsyncpa [#allocation8 + $0x1], 0 }
   0xe   :  { %24 = vsyncpa [#allocation11], 0 }
   0xf   :  { %25 = vsyncpa [#allocation14], 0 }
  0x10   :  { %26 = vsyncpa [#allocation6], 0 }
  0x11   :  { %28 = vsyncpa [#allocation6 + $0x1], 0 }
  0x12   :  { %29 = vsyncpa [#allocation18], 0 }
  0x13   :  { %31 = vsyncpa [#allocation18 + $0x1], 0  ;;  %s1962_s21 = smov 0   ;;  %s1964_s22 = smov 0  }
  0x14   :  { %s1966_s23 = smov 0   ;;  %s1968_s24 = smov 0  }
  0x15   :  { %s1970_s25 = smov 0   ;;  %s1972_s26 = smov 0  }
  0x16 LB: > { %2315 = sst [smem:[#allocation25_spill]] %s1862_s21  ;;  %s1993_s27 = sadd.s32 4294967295, %s1882_s26   ;;  %s1882_s26 = sphi %s1972_s26, %s37_s26   ;;  %s1878_s25 = sphi %s1970_s25, %s2345_s25   ;;  %s1874_s24 = sphi %s1968_s24, %s2344_s24   ;;  %s1870_s23 = sphi %s1966_s23, %s2348_s23   ;;  %s1866_s22 = sphi %s1964_s22, %s2347_s22   ;;  %s1862_s21 = sphi %s1962_s21, %s2346_s21  }
  0x17   : > { %2316 = sst [smem:[#allocation26_spill]] %s1878_s25  ;;  %p1314_p0 = scmp.ge.s32.totalorder %s1882_s26, 1 }
  0x18   : > { %2317 = sst [smem:[#allocation27_spill]] %s1882_s26  ;;  %p72_p1 = scmp.eq.s32.totalorder %s1993_s27, 0 }
  0x19   : > { %p358_p2 = scmp.lt.s32.totalorder %s1882_s26, 3  ;;  %s2318_s3 = sld [smem:[#allocation33_spill]] }
  0x1a   : > { %s1884_s14 = smov [#allocation10]   ;;  %p1319_p6 = scmp.ge.s32.totalorder %s1882_s26, 2 }
  0x1b   : > { %p2001_p3 = pnand %p1314_p0, %p358_p2  ;;  %s371_s15 = sshll.u32 %s1884_s14, 4  ;;  %s372_s15 = int_to_ptr.vmem [resolvable:$true] %s371_s15 }
  0x1c   : > { %s2321_s7 = sld [smem:[#allocation35_spill]]  ;;  %s2293_s20 = smov 64  }
  0x1d   : > { %p1425_p4 = pneg %p2001_p3  ;;  %s2295_s28 = smov 4  }
  0x1e   : > { %s1887_s29 = smov [#allocation13]   ;;  %s1313_s17 = sadd.s32 4294967294, %s1882_s26  }
  0x1f   : > { %s369_s30 = sshll.u32 %s2318_s3, 4  ;;  %p2009_p5 = pnand %p1425_p4, %p72_p1  ;;  %s370_s30 = int_to_ptr.hbm [resolvable:$true] %s369_s30 }
  0x20   : > { %s405_s14 = sshll.u32 %s1887_s29, 4  ;;  %s49_s18 = sadd.s32 1, %s1878_s25  ;;  %s406_s14 = int_to_ptr.vmem [resolvable:$true] %s405_s14 }
  0x21   : > { %1428 = dma.hbm_to_vmem [thread:$0]  (!%p2009_p5), %s370_s30, 256, %s372_s15, [#allocation11], %s2293_s20, %s2293_s20, %s2295_s28  }
  0x22   : > { %s403_s19 = sshll.u32 %s2321_s7, 4  ;;  %p51_p7 = scmp.ge.s32.totalorder %s49_s18, 2  ;;  %s404_s19 = int_to_ptr.hbm [resolvable:$true] %s403_s19 }
  0x23   : > { %1434 = dma.hbm_to_vmem [thread:$0]  (!%p2009_p5), %s404_s19, 256, %s406_s14, [#allocation14], %s2293_s20, %s2293_s20, %s2295_s28  }
  0x24   : > { %s58_s3 = sadd.s32 1, %s1870_s23  ;;  %p65_p8 = scmp.ne.s32.totalorder %s1870_s23, %s1866_s22 }
  0x25   : > { %p66_p9 = scmp.eq.s32.totalorder %s1882_s26, 0  ;;  %s2350_s18 = smov (%p51_p7, %s49_s18), 0 }
  0x26   : > { %2322 = sst [smem:[#allocation28_spill]] %s2350_s18  ;;  %p71_p11 = scmp.ne.s32.totalorder %s1866_s22, %s1862_s21 }
  0x27   : > { %p2035_p10 = por %p66_p9, %p65_p8  ;;  %s53_s15 = ssub.s32 %s1878_s25, %s2350_s18 }
  0x28   : > { %p317_p12 = scmp.eq.s32.totalorder %s1993_s27, 1  ;;  %p56_p13 = scmp.eq.s32.totalorder %s53_s15, 0 }
  0x29   : > { %p2046_p0 = por %p72_p1, %p71_p11  ;;  %p323_p4 = scmp.eq.s32.totalorder %s1313_s17, 1 }
  0x2a   : > { %p2050_p2 = por %p317_p12, %p65_p8  ;;  %p1459_p9 = scmp.lt.s32.totalorder %s1882_s26, 2 }
  0x2b   : > { %s2055_s14 = scalar_select %p56_p13, %s1870_s23, %s58_s3  }
  0x2c   : > { %p2057_p7 = por %p323_p4, %p71_p11  ;;  %s2302_s28 = sand.u32 1, %s1870_s23  }
  0x2d   : > { %2326 = sst [smem:[#allocation29_spill]] %s2055_s14  ;;  %s2064_s7 = sshll.u32 %s1878_s25, 2 }
  0x2e   : > { %s2327_s20 = scalar_select %p2057_p7, 1, 0 }
  0x2f   : > { %s2068_s15 = sshll.u32 %s2302_s28, 2  ;;  %p2072_p8 = pnand %p1459_p9, %p2035_p10 }
  0x30   : > { %2328 = sst [smem:[#allocation30_spill]] %s2327_s20  ;;  %s459_s3 = sand.u32 1, %s1882_s26  }
  0x31   : > { %s2330_s1 = sld [smem:[#allocation32_spill]]  ;;  %s463_s21 = scalar_lea.vmem [#allocation7], %s2068_s15 }
  0x32   : > { %s471_s25 = sshll.u32 %s463_s21, 4  ;;  %s2331_s5 = sld [smem:[#allocation34_spill]]  ;;  %s472_s25 = int_to_ptr.vmem [resolvable:$true] %s471_s25 }
  0x33   : > { %s460_s12 = scalar_lea.sflag [#allocation8], %s459_s3  ;;  %s1888_s26 = smov [#allocation12]  }
  0x34   : > { %s388_s14 = sshll.u32 %s1888_s26, 4  ;;  %s2332_s9 = sld [smem:[#allocation36_spill]]  ;;  %s389_s14 = int_to_ptr.vmem [resolvable:$true] %s388_s14 }
  0x35   : > { %s2334_s28 = smov 64   ;;  %s1889_s3 = smov [#allocation15]  }
  0x36   : > { %s2335_s0 = sld [smem:[#allocation31_spill]]  ;;  %s443_s17 = scalar_lea.vmem [#allocation4], %s2068_s15 }
  0x37   : > { %s467_s20 = scalar_lea.hbm %s2330_s1, %s2064_s7 }
  0x38   : > { %s469_s11 = sshll.u32 %s467_s20, 4  ;;  %s386_s10 = sshll.u32 %s2331_s5, 4  ;;  %s470_s11 = int_to_ptr.hbm [resolvable:$true] %s469_s11  ;;  %s387_s10 = int_to_ptr.hbm [resolvable:$true] %s386_s10 }
  0x39   : > { %1444 = dma.hbm_to_vmem [thread:$0]  (!%p2072_p8), %s470_s11, 64, %s472_s25, %s460_s12  }
  0x3a   : > { %s420_s21 = sshll.u32 %s2332_s9, 4  ;;  %s2333_s20 = smov 4   ;;  %s421_s21 = int_to_ptr.hbm [resolvable:$true] %s420_s21 }
  0x3b   : > { %1431 = dma.hbm_to_vmem [thread:$0]  (!%p2009_p5), %s387_s10, 256, %s389_s14, [#allocation11], %s2334_s28, %s2334_s28, %s2333_s20  }
  0x3c   : > { %s422_s11 = sshll.u32 %s1889_s3, 4  ;;  %s448_s26 = scalar_lea.hbm %s2335_s0, %s2064_s7  ;;  %s423_s11 = int_to_ptr.vmem [resolvable:$true] %s422_s11 }
  0x3d   : > { %1437 = dma.hbm_to_vmem [thread:$0]  (!%p2009_p5), %s421_s21, 256, %s423_s11, [#allocation14], %s2334_s28, %s2334_s28, %s2333_s20  }
  0x3e   : > { %s450_s1 = sshll.u32 %s448_s26, 4  ;;  %s452_s5 = sshll.u32 %s443_s17, 4  ;;  %s451_s1 = int_to_ptr.hbm [resolvable:$true] %s450_s1  ;;  %s453_s5 = int_to_ptr.vmem [resolvable:$true] %s452_s5 }
  0x3f   : > { %s2336_s9 = sand.u32 1, %s1870_s23   ;;  %s486_s25 = scalar_lea.hbm %s2282_s2, %s2064_s7 }
  0x40   : > { %s440_s10 = scalar_lea.sflag [#allocation5], %s2336_s9  ;;  %s488_s30 = sshll.u32 %s486_s25, 4  ;;  %s489_s30 = int_to_ptr.hbm [resolvable:$true] %s488_s30 }
  0x41   : > { %1441 = dma.hbm_to_vmem [thread:$0]  (!%p2072_p8), %s451_s1, 64, %s453_s5, %s440_s10  }
  0x42   : > { %s482_s0 = scalar_lea.vmem [#allocation9], %s2068_s15  ;;  %499 = sbr.rel (%p2001_p3) target bundleno = 1163 (0x48b), region = 64 }
  0x43   : > { %s490_s16 = sshll.u32 %s482_s0, 4  ;;  %s2119_s21 = sand.u32 (!%p2001_p3), 1, %s1866_s22   ;;  %s491_s16 = int_to_ptr.vmem [resolvable:$true] %s490_s16 }
  0x44   : > { %1447 = dma.hbm_to_vmem [thread:$0]  (!%p2072_p8), %s489_s30, 64, %s491_s16, %s460_s12  }
  0x45   : > { %s2122_s5 = sshll.u32 (!%p2001_p3), %s2119_s21, 2  ;;  %s502_s7 = scalar_lea.sflag (!%p2001_p3), [#allocation5], %s2119_s21 }
  0x46   : > { %s505_s9 = scalar_lea.vmem (!%p2001_p3), [#allocation4], %s2122_s5 }
  0x47   : > { %1837 = dma.done.wait (%p2046_p0), %s502_s7, 64  }
  0x48   : > { %1839 = vsyncadd (%p2046_p0), %s502_s7, 4294967232  ;;  %s511_s0 = sand.u32 1, %s1993_s27   ;;  %s515_s13 = scalar_lea.vmem [#allocation7], %s2122_s5 }
  0x49   : > { %s512_s12 = scalar_lea.sflag [#allocation8], %s511_s0 }
  0x4a   : > { %1841 = dma.done.wait (%p2046_p0), %s512_s12, 128  }
  0x4b   : > { %1843 = vsyncadd (%p2046_p0), %s512_s12, 4294967168  ;;  %s525_s18 = scalar_lea.vmem [#allocation9], %s2122_s5 }
  0x4c   : > { %1845 = dma.done.wait (%p72_p1), [#allocation11], 512  }
  0x4d   : > { %1847 = vsyncadd (%p72_p1), [#allocation11], 4294966784 }
  0x4e   : > { %1849 = dma.done.wait (%p72_p1), [#allocation14], 512  }
  0x4f   : > { %1851 = vsyncadd (%p72_p1), [#allocation14], 4294966784  ;;  %v1391_v0 = vld [vmem:[#allocation12 + $0x8] sm:$0xff]  ;;  %v1395_v1 = vld [vmem:[#allocation10 + $0x8] sm:$0xff]  ;;  %vm629_vm0 = vcmask 261120   ;;  %vm685_vm1 = vcmask 257024  }
  0x50   : > { %v1390_v2 = vld [vmem:[#allocation12] sm:$0xff]  ;;  %639 = vmatpush.bf16.msra.mxu0 %v1391_v0  ;;  %720 = vmatpush.bf16.msra.mxu2 %v1395_v1  ;;  %v1394_v3 = vld [vmem:[#allocation10] sm:$0xff]  ;;  %v689_v5 = vld [vmem:[%s505_s9] sm:$0xf]  ;;  %vm732_vm2 = vcmask 64512   ;;  %s1890_s28 = smov 112  }
  0x51   : > { %v607_v4 = vld [vmem:[%s515_s13] sm:$0xf]  ;;  %v1526_v6 = vld [vmem:[%s2286_s6] ss:$0 sm:$0xff]  ;;  %s1891_s11 = smov 120   ;;  %s1892_s26 = smov 104  }
  0x52   : > { %v1527_v10 = vld [vmem:[%s2284_s4] ss:$0 sm:$0xff]  ;;  %v1393_v25 = vld [vmem:[#allocation13 + $0x8] sm:$0xff]  ;;  %v608_v27 = vld [vmem:[%s525_s18] sm:$0xf]  ;;  %vm781_vm3 = vcmask 1043456  }
  0x53   : > { %676 = vmatpush.bf16.msra.mxu1 %v1393_v25  ;;  %v1392_v26 = vld [vmem:[#allocation13] sm:$0xff]  ;;  %s1335_s10 = sshll.u32 %s2119_s21, 5  ;;  %s1893_s3 = smov 8  }
  0x54   : > { %640 = vmatpush.bf16.msra.mxu0 %v1390_v2  ;;  %721 = vmatpush.bf16.msra.mxu2 %v1394_v3  ;;  %v1528_v40 = vld [vmem:[%s2288_s8] ss:$0 sm:$0xff]  ;;  %s2191_s14 = scalar_lea.vmem [#allocation17], %s1335_s10  ;;  %s1894_s25 = smov 24  }
  0x55   : > { %s1895_s30 = smov 16   ;;  %s1398_s16 = sshll.u32 %s1874_s24, 5 }
  0x56   : > { %s2337_s9 = sld [smem:[#allocation39_spill]]  ;;  %s1110_s12 = sshll.u32 %s2191_s14, 4  ;;  %s1111_s12 = int_to_ptr.vmem [resolvable:$true] %s1110_s12 }
  0x57   : > { %1344 = vmatmul.msk.bf16.vlgmr.msra.gmra.mxu0 %vm629_vm0, %v607_v4  ;;  %1362 = vmatmul.msk.bf16.vlgmr.msra.gmra.mxu2 %vm629_vm0, %v689_v5  ;;  %s1082_s18 = scalar_lea.sflag [#allocation18], %s2119_s21 }
  0x58   : > { %677 = vmatpush.bf16.msra.mxu1 %v1392_v26 }
  0x5b   : > { %1353 = vmatmul.msk.bf16.vlgmr.msra.gmra.mxu1 %vm629_vm0, %v608_v27 }
  0x5c   : > { %s1109_s0 = scalar_lea.hbm %s2337_s9, %s1398_s16 }
  0x5d   : > { %s1112_s13 = sshll.u32 %s1109_s0, 4  ;;  %s1113_s13 = int_to_ptr.hbm [resolvable:$true] %s1112_s13 }
  0x5e   : > { %s1770_s19 = sshra.s32 %s1113_s13, 4  ;;  %s1771_s19 = int_to_ptr.hbm [resolvable:$true] %s1770_s19 }
  0x5f   : > { %s1772_s15 = scalar_lea.hbm %s1771_s19, 32  ;;  %p1777_p10 = scmp.lt.s32.totalorder %s1771_s19, %s2337_s9 }
  0x60   : > { %p1773_p1 = scmp.ne.s32.totalorder %s1771_s19, %s1772_s15 }
  0x62   : > { %p1774_p3 = pnand %p1773_p1, %p2050_p2 }
  0x64   : > { %p1775_p5 = pneg %p1774_p3 }
  0xd4   : > { %v642_v7 = vpop.f32.mrf.mxu0 }
  0xd5   : > { %v643_v8 = vadd.f32 %v1526_v6, %v642_v7 }
  0xd7   : > { %v646_v9 = vmax.f32 %v643_v8, 0.0 }
  0xd8   : > { %v679_v41 = vpop.f32.mrf.mxu1 }
  0xd9   : > { %v684_v11 = vpack.c.bf16 %v646_v9, %v646_v9  ;;  %v680_v42 = vadd.f32 %v1528_v40, %v679_v41 }
  0xda   : > { %v723_v12 = vpop.f32.mrf.mxu2 }
  0xdb   : > { %686 = vst.msk [vmem:[#allocation2] sm:$0xf] %vm685_vm1, %v684_v11  ;;  %v724_v13 = vadd.f32 %v1527_v10, %v723_v12  ;;  %v683_v43 = vmax.f32 %v680_v42, 0.0 }
  0xdc   : > { %v644_v14 = vpop.f32.mrf.mxu0 }
  0xdd   : > { %v727_v15 = vmax.f32 %v724_v13, 0.0  ;;  %v687_v44 = vpack.c.bf16 %v683_v43, %v683_v43 }
  0xdf   : > { %v728_v16 = vmul.f32 0.35355338, %v727_v15  ;;  %688 = vst.msk [vmem:[#allocation3] sm:$0xf] %vm685_vm1, %v687_v44 }
  0xe0   : > { %v681_v45 = vpop.f32.mrf.mxu1 }
  0xe1   : > { %v729_v17 = vpack.c.bf16 %v728_v16, %v728_v16 }
  0xe2   : > { %v725_v18 = vpop.f32.mrf.mxu2  ;;  %v730_v19 = vld [vmem:[#allocation2] sm:$0xf] }
  0xe3   : > { %v799_v20 = vunpack.c.l.b16 %v729_v17  ;;  %v737_v21 = vsel %vm732_vm2, %v730_v19, 0  ;;  %v804_v22 = vunpack.c.l.b16 %v730_v19 }
  0xe4   : > { %746 = vmatpush.bf16.xpose.msra.mxu3 %v737_v21 }
  0xe5   : > { %v805_v23 = vpack.c.b16 %v804_v22, %v804_v22  ;;  %v800_v24 = vpack.c.b16 %v799_v20, %v799_v20 }
  0xe6   : > { %v731_v46 = vld [vmem:[#allocation3] sm:$0xf] }
  0xe7   : > { %878 = vrot.lane.b32.xlu2 %v800_v24, %s1890_s28  ;;  %880 = vrot.lane.b32.xlu1 %v805_v23, %s1890_s28  ;;  %v783_v47 = vsel %vm781_vm3, %v731_v46, 0  ;;  %v855_v16 = vunpack.c.l.b16 %v731_v46 }
  0xe8   : > { %806 = vrot.lane.b32.xlu0 %v805_v23, %s1891_s11  ;;  %792 = vmatpush.bf16.msrb.mxu0 %v783_v47 }
  0xe9   : > { %v856_v22 = vpack.c.b16 %v855_v16, %v855_v16 }
  0xeb   : > { %1363 = vmatmul.msk.bf16.vlgmr.msra.gmra.mxu3 %vm732_vm2, %v729_v17 }
  0xef   : > { %949 = vrot.lane.b32.xlu2 %v800_v24, %s1892_s26  ;;  %951 = vrot.lane.b32.xlu1 %v805_v23, %s1892_s26 }
  0xf0   : > { %801 = vrot.lane.b32.xlu0 %v800_v24, %s1891_s11 }
 0x141   : > { %v879_v32 = vpop.permute.xlu2 %878 }
 0x149   : > { %v950_v38 = vpop.permute.xlu2 %949 }
 0x159   : > { %v881_v28 = vpop.permute.xlu1 %880 }
 0x15a   : > { %v807_v29 = vpop.permute.xlu0 %806  ;;  %v886_v30 = vsel %vm732_vm2, %v881_v28, 0 }
 0x15b   : > { %v812_v31 = vsel %vm732_vm2, %v807_v29, 0  ;;  %895 = vmatpush.bf16.xpose.msrb.mxu3 %v886_v30 }
 0x15c   : > { %821 = vmatpush.bf16.xpose.msrb.mxu1 %v812_v31 }
 0x161   : > { %v952_v33 = vpop.permute.xlu1 %951 }
 0x162   : > { %v957_v34 = vsel %vm732_vm2, %v952_v33, 0  ;;  %v802_v35 = vpop.permute.xlu0 %801  ;;  %1368 = vmatmul.msk.bf16.vlgmr.msrb.gmra.mxu3 %vm732_vm2, %v879_v32 }
 0x163   : > { %1365 = vmatmul.msk.bf16.vlgmr.msrb.gmra.mxu1 %vm732_vm2, %v802_v35 }
 0x164   : > { %966 = vmatpush.bf16.xpose.msra.mxu1 %v957_v34 }
 0x16e   : > { %v748_v36 = vpop.f32.mrf.mxu3 }
 0x16f   : > { %v752_v37 = vsel %vm732_vm2, %v748_v36, -inf }
 0x170   : > { %753 = vmax.xlane.f32.xlu1 %v752_v37 }
 0x173   : > { %1371 = vmatmul.msk.bf16.vlgmr.msra.gmra.mxu1 %vm732_vm2, %v950_v38 }
 0x176   : > { %v750_v39 = vpop.f32.mrf.mxu3 }
 0x1e0   : > { %v823_v48 = vpop.f32.mrf.mxu1 }
 0x1e1   : > { %v827_v49 = vsel %vm732_vm2, %v823_v48, -inf }
 0x1e2   : > { %828 = vmax.xlane.f32.xlu0 %v827_v49 }
 0x1e3   : > { %v754_v50 = vpop.xlane.xlu1 %753 }
 0x1e4   : > { %v755_v51 = vsub.f32 %v748_v36, %v754_v50 }
 0x1e5   : > { %v897_v52 = vpop.f32.mrf.mxu3 }
 0x1e6   : > { %v756_v53 = vmul.f32 1.442695, %v755_v51  ;;  %v901_v61 = vsel %vm732_vm2, %v897_v52, -inf }
 0x1e8   : > { %1530 = vpow2.f32 %v756_v53  ;;  %v825_v54 = vpop.f32.mrf.mxu1 }
 0x1ed   : > { %v899_v55 = vpop.f32.mrf.mxu3 }
 0x1ee   : > { %v1531_v56 = vpop.eup %1530 }
 0x1ef   : > { %v758_v57 = vsel %vm732_vm2, %v1531_v56, 0.0 }
 0x1f0   : > { %v968_v58 = vpop.f32.mrf.mxu1  ;;  %759 = vadd.xlane.f32.xlu1 %v758_v57 }
 0x1f1   : > { %v972_v59 = vsel %vm732_vm2, %v968_v58, -inf }
 0x1f2   : > { %973 = vmax.xlane.f32.xlu2 %v972_v59 }
 0x1f8   : > { %v970_v60 = vpop.f32.mrf.mxu1 }
 0x1fa   : > { %902 = vmax.xlane.f32.xlu2 %v901_v61 }
 0x255   : > { %v829_v62 = vpop.xlane.xlu0 %828 }
 0x256   : > { %v830_v63 = vsub.f32 %v823_v48, %v829_v62 }
 0x258   : > { %v831_v0 = vmul.f32 1.442695, %v830_v63 }
 0x25a   : > { %1532 = vpow2.f32 %v831_v0 }
 0x260   : > { %v2181_v1 = vpop.eup %1532 }
 0x261   : > { %v833_v2 = vsel %vm732_vm2, %v2181_v1, 0.0 }
 0x262   : > { %834 = vadd.xlane.f32.xlu0 %v833_v2 }
 0x263   : > { %v760_v3 = vpop.xlane.xlu1 %759 }
 0x264   : > { %1534 = vrcp.f32 %v760_v3  ;;  %v772_v11 = vand.u32 2147483648, %v760_v3  ;;  %v770_v14 = vand.u32 2147483647, %v760_v3  ;;  %vm766_vm5 = vweird.f32 %v760_v3 }
 0x265   : > { %v974_v4 = vpop.xlane.xlu2 %973 }
 0x266   : > { %v975_v5 = vsub.f32 %v968_v58, %v974_v4  ;;  %v773_v20 = vor.u32 1.1754944e-38, %v772_v11  ;;  %vm771_vm7 = vcmp.eq.f32.partialorder %v770_v14, 8.507059e+37 }
 0x268   : > { %v976_v6 = vmul.f32 1.442695, %v975_v5 }
 0x26a   : > { %v1535_v7 = vpop.eup %1534  ;;  %1536 = vpow2.f32 %v976_v6 }
 0x26b   : > { %v762_v8 = vmul.f32 %v1535_v7, %v760_v3  ;;  %vm767_vm4 = vweird.f32 %v1535_v7 }
 0x26c   : > { %vm768_vm6 = vmor %vm766_vm5, %vm767_vm4 }
 0x26d   : > { %v763_v9 = vsub.f32 1.0, %v762_v8  ;;  %v903_v10 = vpop.xlane.xlu2 %902 }
 0x26e   : > { %v904_v12 = vsub.f32 %v897_v52, %v903_v10 }
 0x26f   : > { %v764_v13 = vmul.f32 %v1535_v7, %v763_v9 }
 0x270   : > { %v2185_v15 = vpop.eup %1536  ;;  %v905_v17 = vmul.f32 1.442695, %v904_v12 }
 0x271   : > { %v765_v18 = vadd.f32 %v1535_v7, %v764_v13  ;;  %v978_v19 = vsel %vm732_vm2, %v2185_v15, 0.0 }
 0x272   : > { %1538 = vpow2.f32 %v905_v17  ;;  %979 = vadd.xlane.f32.xlu2 %v978_v19  ;;  %v1397_v17 = vld [vmem:[#allocation15 + $0x8] sm:$0xff] }
 0x273   : > { %v769_v21 = vsel %vm768_vm6, %v1535_v7, %v765_v18  ;;  %1067 = vmatpush.bf16.msra.mxu3 %v1397_v17  ;;  %v1396_v18 = vld [vmem:[#allocation15] sm:$0xff] }
 0x274   : > { %v774_v23 = vsel %vm771_vm7, %v773_v20, %v769_v21  ;;  %vm1035_vm7 = vcmask 195584  }
 0x275   : > { %v775_v24 = vmul.f32 %v1531_v56, %v774_v23 }
 0x276   : > { %857 = vrot.lane.b32.xlu0 %v856_v22, %s1891_s11 }
 0x277   : > { %776 = vst.msk [vmem:[%s2191_s14] sm:$0xff] %vm732_vm2, %v775_v24  ;;  %v777_v25 = vpack.c.bf16 %v775_v24, %v775_v24  ;;  %1068 = vmatpush.bf16.msra.mxu3 %v1396_v18 }
 0x278   : > { %v2195_v26 = vpop.eup %1538 }
 0x279   : > { %1364 = vmatmul.msk.bf16.vlgmr.msrb.gmra.mxu0 %vm732_vm2, %v777_v25  ;;  %v907_v27 = vsel %vm732_vm2, %v2195_v26, 0.0 }
 0x27a   : > { %908 = vadd.xlane.f32.xlu1 %v907_v27 }
 0x28a   : > { %999 = vrot.lane.b32.xlu2 %v856_v22, %s1892_s26 }
 0x293   : > { %928 = vrot.lane.b32.xlu1 %v856_v22, %s1890_s28  ;;  %s1776_s28 = scalar_lea.hbm %s2337_s9, 64 }
 0x294   : > { %p1778_p11 = scmp.lt.s32.totalorder %s1776_s28, %s1772_s15 }
 0x296   : > { %p1779_p12 = por %p1778_p11, %p1777_p10 }
 0x298   : > { %p1780_p13 = pnand %p1779_p12, %p1775_p5 }
 0x2d5   : > { %v835_v28 = vpop.xlane.xlu0 %834 }
 0x2d6   : > { %1540 = vrcp.f32 %v835_v28  ;;  %v847_v33 = vand.u32 2147483648, %v835_v28  ;;  %v845_v34 = vand.u32 2147483647, %v835_v28  ;;  %vm841_vm9 = vweird.f32 %v835_v28 }
 0x2d8   : > { %v848_v37 = vor.u32 1.1754944e-38, %v847_v33  ;;  %vm846_vm11 = vcmp.eq.f32.partialorder %v845_v34, 8.507059e+37 }
 0x2dc   : > { %v1541_v29 = vpop.eup %1540 }
 0x2dd   : > { %v837_v30 = vmul.f32 %v1541_v29, %v835_v28  ;;  %vm842_vm8 = vweird.f32 %v1541_v29 }
 0x2de   : > { %vm843_vm10 = vmor %vm841_vm9, %vm842_vm8 }
 0x2df   : > { %v838_v31 = vsub.f32 1.0, %v837_v30 }
 0x2e1   : > { %v839_v32 = vmul.f32 %v1541_v29, %v838_v31 }
 0x2e3   : > { %v840_v35 = vadd.f32 %v1541_v29, %v839_v32 }
 0x2e5   : > { %v844_v36 = vsel %vm843_vm10, %v1541_v29, %v840_v35  ;;  %v980_v38 = vpop.xlane.xlu2 %979 }
 0x2e6   : > { %1542 = vrcp.f32 %v980_v38  ;;  %v849_v39 = vsel %vm846_vm11, %v848_v37, %v844_v36  ;;  %v992_v50 = vand.u32 2147483648, %v980_v38  ;;  %v990_v52 = vand.u32 2147483647, %v980_v38 }
 0x2e7   : > { %v850_v41 = vmul.f32 %v2181_v1, %v849_v39  ;;  %vm986_vm13 = vweird.f32 %v980_v38 }
 0x2e8   : > { %v858_v40 = vpop.permute.xlu0 %857  ;;  %v993_v55 = vor.u32 1.1754944e-38, %v992_v50  ;;  %vm991_vm15 = vcmp.eq.f32.partialorder %v990_v52, 8.507059e+37 }
 0x2e9   : > { %v863_v42 = vsel %vm781_vm3, %v858_v40, 0  ;;  %1366 = vst.msk [vmem:[%s2191_s14 + $0x8] sm:$0xff] %vm732_vm2, %v850_v41  ;;  %v853_v43 = vpack.c.bf16 %v850_v41, %v850_v41 }
 0x2ea   : > { %872 = vmatpush.bf16.msrb.mxu2 %v863_v42 }
 0x2ec   : > { %v1543_v44 = vpop.eup %1542 }
 0x2ed   : > { %v982_v45 = vmul.f32 %v1543_v44, %v980_v38  ;;  %1367 = vmatmul.msk.bf16.vlgmr.msrb.gmra.mxu2 %vm732_vm2, %v853_v43  ;;  %v909_v46 = vpop.xlane.xlu1 %908  ;;  %v1000_v47 = vpop.permute.xlu2 %999  ;;  %vm987_vm12 = vweird.f32 %v1543_v44 }
 0x2ee   : > { %1544 = vrcp.f32 %v909_v46  ;;  %v1005_v49 = vsel %vm781_vm3, %v1000_v47, 0  ;;  %vm988_vm14 = vmor %vm986_vm13, %vm987_vm12  ;;  %v921_v62 = vand.u32 2147483648, %v909_v46  ;;  %v919_v0 = vand.u32 2147483647, %v909_v46 }
 0x2ef   : > { %v983_v48 = vsub.f32 1.0, %v982_v45  ;;  %1014 = vmatpush.bf16.msra.mxu2 %v1005_v49  ;;  %vm915_vm4 = vweird.f32 %v909_v46 }
 0x2f0   : > { %v922_v3 = vor.u32 1.1754944e-38, %v921_v62  ;;  %vm920_vm6 = vcmp.eq.f32.partialorder %v919_v0, 8.507059e+37 }
 0x2f1   : > { %v984_v51 = vmul.f32 %v1543_v44, %v983_v48 }
 0x2f3   : > { %v985_v53 = vadd.f32 %v1543_v44, %v984_v51 }
 0x2f4   : > { %v1545_v54 = vpop.eup %1544 }
 0x2f5   : > { %v989_v56 = vsel %vm988_vm14, %v1543_v44, %v985_v53  ;;  %v911_v57 = vmul.f32 %v1545_v54, %v909_v46  ;;  %vm916_vm1 = vweird.f32 %v1545_v54 }
 0x2f6   : > { %v994_v58 = vsel %vm991_vm15, %v993_v55, %v989_v56  ;;  %v794_v59 = vpop.f32.mrf.mxu0  ;;  %vm917_vm5 = vmor %vm915_vm4, %vm916_vm1 }
 0x2f7   : > { %v995_v60 = vmul.f32 %v2185_v15, %v994_v58  ;;  %v912_v61 = vsub.f32 1.0, %v911_v57 }
 0x2f9   : > { %1372 = vst.msk [vmem:[%s2191_s14 + $0x18] sm:$0xff] %vm732_vm2, %v995_v60  ;;  %v913_v63 = vmul.f32 %v1545_v54, %v912_v61  ;;  %v998_v2 = vpack.c.bf16 %v995_v60, %v995_v60 }
 0x2fb   : > { %v914_v1 = vadd.f32 %v1545_v54, %v913_v63 }
 0x2fd   : > { %v918_v4 = vsel %vm917_vm5, %v1545_v54, %v914_v1  ;;  %1373 = vmatmul.msk.bf16.vlgmr.msra.gmra.mxu2 %vm732_vm2, %v998_v2 }
 0x2fe   : > { %v923_v5 = vsel %vm920_vm6, %v922_v3, %v918_v4  ;;  %v796_v6 = vpop.f32.mrf.mxu0 }
 0x2ff   : > { %v924_v7 = vmul.f32 %v2195_v26, %v923_v5 }
 0x301   : > { %1369 = vst.msk [vmem:[%s2191_s14 + $0x10] sm:$0xff] %vm732_vm2, %v924_v7  ;;  %v927_v10 = vpack.c.bf16 %v924_v7, %v924_v7 }
 0x305   : > { %v929_v8 = vpop.permute.xlu1 %928 }
 0x306   : > { %v934_v9 = vsel %vm781_vm3, %v929_v8, 0  ;;  %vm1033_vm3 = vcmask 130048  }
 0x307   : > { %943 = vmatpush.bf16.msra.mxu0 %v934_v9 }
 0x30a   : > { %1370 = vmatmul.msk.bf16.vlgmr.msra.gmra.mxu0 %vm732_vm2, %v927_v10 }
 0x370   : > { %v874_v11 = vpop.f32.mrf.mxu2 }
 0x371   : > { %1021 = vrot.lane.b32.xlu0 %v874_v11, %s1893_s3 }
 0x378   : > { %v876_v12 = vpop.f32.mrf.mxu2 }
 0x380   : > { %v1016_v13 = vpop.f32.mrf.mxu2 }
 0x381   : > { %1029 = vrot.lane.b32.xlu2 %v1016_v13, %s1894_s25 }
 0x387   : > { %v945_v14 = vpop.f32.mrf.mxu0 }
 0x388   : > { %1025 = vrot.lane.b32.xlu0 %v945_v14, %s1895_s30  ;;  %v1018_v15 = vpop.f32.mrf.mxu2 }
 0x38f   : > { %v947_v16 = vpop.f32.mrf.mxu0 }
 0x3db   : > { %v1030_v22 = vpop.permute.xlu2 %1029 }
 0x3e3   : > { %v1022_v19 = vpop.permute.xlu0 %1021 }
 0x3e4   : > { %v1032_v20 = vsel %vm732_vm2, %v794_v59, %v1022_v19 }
 0x3fa   : > { %v1026_v21 = vpop.permute.xlu0 %1025 }
 0x3fb   : > { %v1034_v23 = vsel %vm1033_vm3, %v1032_v20, %v1026_v21 }
 0x3fc   : > { %v1036_v24 = vsel %vm1035_vm7, %v1034_v23, %v1030_v22 }
 0x3fd   : > { %v1037_v25 = vpack.c.bf16 %v1036_v24, %v1036_v24 }
 0x3ff   : > { %1382 = vmatmul.msk.bf16.vlgmr.msra.gmra.mxu3 %vm629_vm0, %v1037_v25 }
 0x400   : > { %1783 = shalt.err (!%p1780_p13)
}
 0x401   : > { %s1896_s1 = smov 128   ;;  %s1334_s17 = sshll.u32 %s2119_s21, 3 }
 0x402   : > { %1422 = dma.vmem_to_hbm [thread:$0]  (%p2050_p2), %s1111_s12, 512, %s1113_s13, %s1082_s18, %s1896_s1, %s1896_s1, %s1893_s3  }
 0x403   : > { %s1385_s10 = sshll.u32 %s1874_s24, 3  ;;  %s2338_s30 = sld [smem:[#allocation37_spill]] }
 0x404   : > { %s2339_s7 = sld [smem:[#allocation38_spill]]  ;;  %s594_s19 = scalar_lea.vmem [#allocation16], %s1334_s17 }
 0x405   : > { %s1095_s15 = sshll.u32 %s594_s19, 4  ;;  %s1077_s24 = scalar_lea.sflag [#allocation6], %s2119_s21  ;;  %s1096_s15 = int_to_ptr.vmem [resolvable:$true] %s1095_s15 }
 0x409   : > { %v1529_v26 = vld [vmem:[%s2338_s30] ss:$0 sm:$0xff] }
 0x40a   : > { %s1093_s0 = scalar_lea.hbm %s2339_s7, %s1385_s10  ;;  %s1804_s20 = scalar_lea.hbm %s2339_s7, 16 }
 0x40b   : > { %s1097_s27 = sshll.u32 %s1093_s0, 4  ;;  %s1098_s27 = int_to_ptr.hbm [resolvable:$true] %s1097_s27 }
 0x40c   : > { %s1798_s3 = sshra.s32 %s1098_s27, 4  ;;  %s1799_s3 = int_to_ptr.hbm [resolvable:$true] %s1798_s3 }
 0x40d   : > { %s1800_s12 = scalar_lea.hbm %s1799_s3, 8  ;;  %p1805_p8 = scmp.lt.s32.totalorder %s1799_s3, %s2339_s7 }
 0x40e   : > { %p1801_p0 = scmp.ne.s32.totalorder %s1799_s3, %s1800_s12  ;;  %p1806_p1 = scmp.lt.s32.totalorder %s1804_s20, %s1800_s12 }
 0x410   : > { %p1802_p4 = pnand %p1801_p0, %p2050_p2  ;;  %p1807_p3 = por %p1806_p1, %p1805_p8 }
 0x412   : > { %p1803_p9 = pneg %p1802_p4 }
 0x414   : > { %p1808_p5 = pnand %p1807_p3, %p1803_p9 }
 0x482   : > { %v1070_v27 = vpop.f32.mrf.mxu3 }
 0x483   : > { %v1071_v28 = vadd.f32 %v1529_v26, %v1070_v27 }
 0x485   : > { %v1074_v29 = vmax.f32 %v1071_v28, 0.0 }
 0x487   : > { %1075 = vst.msk [vmem:[%s594_s19] sm:$0xff] %vm629_vm0, %v1074_v29 }
 0x488   : > { %1811 = shalt.err (!%p1808_p5)
}
 0x489   : > { %1421 = dma.vmem_to_hbm [thread:$0]  (%p2050_p2), %s1096_s15, 128, %s1098_s27, %s1077_s24  }
 0x48a   : > { %v1072_v30 = vpop.f32.mrf.mxu3 }
 0x48b PF: > { %s2340_s21 = sld [smem:[#allocation25_spill]]  ;;  %p1449_p10 = pnand %p1319_p6, %p2057_p7 }
 0x48c   : > { %s2342_s1 = sld [smem:[#allocation27_spill]] }
 0x48d   : > { %p1450_p11 = pneg %p1449_p10 }
 0x491   : > { %s1127_s17 = sand.u32 1, %s2340_s21  }
 0x492   : > { %s1128_s10 = scalar_lea.sflag [#allocation6], %s1127_s17 }
 0x493   : > { %1853 = dma.done.wait (%p1450_p11), %s1128_s10, 128  }
 0x494   : > { %1855 = vsyncadd (%p1450_p11), %s1128_s10, 4294967168  ;;  %s1138_s14 = scalar_lea.sflag [#allocation18], %s1127_s17 }
 0x495   : > { %1857 = dma.done.wait (%p1450_p11), %s1138_s14, 512  }
 0x496   : > { %1859 = vsyncadd (%p1450_p11), %s1138_s14, 4294966784  ;;  %s37_s26 = sadd.s32 1, %s2342_s1   ;;  %s2343_s29 = sld [smem:[#allocation29_spill]] }
 0x497   : > { %p34_p12 = scmp.ge.s32.totalorder %s37_s26, 4   ;;  %s2344_s24 = sld [smem:[#allocation26_spill]] }
 0x498   : > { %s2345_s25 = sld [smem:[#allocation28_spill]]  ;;  %s2346_s21 = smov %s1866_s22 }
 0x499   : > { %s2347_s22 = smov %s1870_s23  ;;  %36 = sbr.rel (!%p34_p12) target bundleno = 22 (0x16), region = 173 }
 0x49c   : > { %s2348_s23 = smov %s2343_s29 }
 0x49e   :  { %1144 = vsyncpa [#allocation5], 1 }
 0x49f   :  { %1146 = vsyncpa [#allocation5 + $0x1], 1 }
 0x4a0   :  { %1147 = vsyncpa [#allocation8], 1 }
 0x4a1   :  { %1149 = vsyncpa [#allocation8 + $0x1], 1 }
 0x4a2   :  { %1150 = vsyncpa [#allocation11], 1 }
 0x4a3   :  { %1151 = vsyncpa [#allocation14], 1 }
 0x4a4   :  { %1152 = vsyncpa [#allocation6], 1 }
 0x4a5   :  { %1154 = vsyncpa [#allocation6 + $0x1], 1 }
 0x4a6   :  { %1155 = vsyncpa [#allocation18], 1 }
 0x4a7   :  { %1157 = vsyncpa [#allocation18 + $0x1], 1 }

</bundles_post_ra>
